<compile_context>
chip_gen: v7x
topology: tpu7x:2x2x1
jax: 0.10.0
libtpu: 0.0.40
codegen_flags: <defaults>
</compile_context>

<pallas_src>
from functools import partial

import jax
import jax.numpy as jnp
from jax.experimental import pallas as pl
from jax.experimental.pallas import tpu as pltpu

LANE = 128
NEG_BIG = -1e30


def _round_up(x, m):
    return ((x + m - 1) // m) * m


def ppo_forward_kernel(
    x_ref, mask_ref,
    w1_ref, b1_ref, w2_ref, b2_ref, w3_ref, b3_ref, w4_ref, b4_ref,
    wh_ref, bh_ref,
    out_ref,
    *, output_dim,
):
    x = x_ref[...]

    # --- shared_layers: 4 x (Linear -> ReLU) --- (padded lanes stay exactly 0)
    h = jnp.maximum(
        jnp.dot(x, w1_ref[...], preferred_element_type=jnp.float32) + b1_ref[...], 0.0)
    h = jnp.maximum(
        jnp.dot(h, w2_ref[...], preferred_element_type=jnp.float32) + b2_ref[...], 0.0)
    h = jnp.maximum(
        jnp.dot(h, w3_ref[...], preferred_element_type=jnp.float32) + b3_ref[...], 0.0)
    h = jnp.maximum(
        jnp.dot(h, w4_ref[...], preferred_element_type=jnp.float32) + b4_ref[...], 0.0)

    # --- F.normalize(dim=-1): x / max(||x||, 1e-12) == x * rsqrt(max(sumsq, 1e-24)) ---
    sumsq = jnp.sum(h * h, axis=-1, keepdims=True)
    h = h * jax.lax.rsqrt(jnp.maximum(sumsq, 1e-24))

    # --- fused policy+value head: one MXU pass over (hidden_p, out_p) ---
    head = jnp.dot(h, wh_ref[...], preferred_element_type=jnp.float32) + bh_ref[...]

    col = jax.lax.broadcasted_iota(jnp.int32, head.shape, 1)
    is_policy = col < output_dim        # real policy lanes
    is_value = col == output_dim        # fused value lane

    # masked_fill(action_mask == 0, -inf); padded lanes (mask == 0) also masked.
    # Large finite negative instead of -inf -> no NaN for all-masked rows.
    valid = jnp.logical_and(is_policy, mask_ref[...] != 0.0)
    masked = jnp.where(valid, head, NEG_BIG)

    # softmax(dim=-1) over the padded row (masked lanes contribute exactly 0)
    m = jnp.max(masked, axis=-1, keepdims=True)
    e = jnp.exp(masked - m)
    p = e * pl.reciprocal(jnp.sum(e, axis=-1, keepdims=True), approx=False)

    # clamp(1e-7, 1) over the real policy lanes, then renormalize
    p = jnp.clip(p, 1e-7, 1.0)
    p = jnp.where(is_policy, p, 0.0)
    p = p * pl.reciprocal(jnp.sum(p, axis=-1, keepdims=True), approx=False)

    # pack: policy in lanes [0, output_dim), raw value at lane output_dim
    out_ref[...] = (p + jnp.where(is_value, head, 0.0)).astype(out_ref.dtype)


def init_params(key, input_dim, hidden_dim, output_dim):
    """Unpadded params, PyTorch-Linear-like uniform fan-in init, (in, out) layout."""
    def linear(key, fan_in, fan_out):
        kw, kb = jax.random.split(key)
        bound = 1.0 / jnp.sqrt(fan_in)
        w = jax.random.uniform(kw, (fan_in, fan_out), jnp.float32, -bound, bound)
        b = jax.random.uniform(kb, (1, fan_out), jnp.float32, -bound, bound)
        return w, b

    keys = jax.random.split(key, 6)
    w1, b1 = linear(keys[0], input_dim, hidden_dim)
    w2, b2 = linear(keys[1], hidden_dim, hidden_dim)
    w3, b3 = linear(keys[2], hidden_dim, hidden_dim)
    w4, b4 = linear(keys[3], hidden_dim, hidden_dim)
    wp, bp = linear(keys[4], hidden_dim, output_dim)
    wv, bv = linear(keys[5], hidden_dim, 1)
    return dict(w1=w1, b1=b1, w2=w2, b2=b2, w3=w3, b3=b3, w4=w4, b4=b4,
                wp=wp, bp=bp, wv=wv, bv=bv)


def pad_and_fuse_params(p, input_dim, hidden_dim, output_dim):
    """One-time layout plumbing: zero-pad feature dims to 128 and fuse the
    value head column into the policy head weight/bias."""
    din_p = _round_up(input_dim, LANE)
    dh_p = _round_up(hidden_dim, LANE)
    dout_p = _round_up(output_dim + 1, LANE)  # policy lanes + 1 value lane

    def pad2(w, rows, cols):
        out = jnp.zeros((rows, cols), jnp.float32)
        return out.at[:w.shape[0], :w.shape[1]].set(w.astype(jnp.float32))

    wh = jnp.concatenate([p["wp"], p["wv"]], axis=1)   # (hidden, output_dim + 1)
    bh = jnp.concatenate([p["bp"], p["bv"]], axis=1)   # (1, output_dim + 1)

    # TODO(synk): on v6e/v7x the four shared-layer weights could be cast to
    # bfloat16 (f32 accumulation kept) for MXU peak; left f32 here to preserve
    # tight numerical agreement with the reference.
    return dict(
        w1=pad2(p["w1"], din_p, dh_p), b1=pad2(p["b1"], 1, dh_p),
        w2=pad2(p["w2"], dh_p, dh_p),  b2=pad2(p["b2"], 1, dh_p),
        w3=pad2(p["w3"], dh_p, dh_p),  b3=pad2(p["b3"], 1, dh_p),
        w4=pad2(p["w4"], dh_p, dh_p),  b4=pad2(p["b4"], 1, dh_p),
        wh=pad2(wh, dh_p, dout_p),     bh=pad2(bh, 1, dout_p),
    )


def ppo_forward(x, action_mask, padded_params, *, output_dim):
    B, in_dim = x.shape
    din_p = padded_params["w1"].shape[0]
    dout_p = padded_params["wh"].shape[1]

    # Batch tile: multiple of 8 sublanes, capped so VMEM stays comfortable on
    # every generation (weights are resident; activations double-buffered).
    TB = min(512, _round_up(max(B, 1), 8))
    B_pad = _round_up(B, TB)

    x_p = jnp.zeros((B_pad, din_p), jnp.float32).at[:B, :in_dim].set(
        x.astype(jnp.float32))
    mask_p = jnp.zeros((B_pad, dout_p), jnp.float32).at[:B, :action_mask.shape[1]].set(
        action_mask.astype(jnp.float32))

    pp = padded_params
    args = (
        x_p, mask_p,
        pp["w1"], pp["b1"], pp["w2"], pp["b2"],
        pp["w3"], pp["b3"], pp["w4"], pp["b4"],
        pp["wh"], pp["bh"],
    )

    def batch_spec(ncols):
        return pl.BlockSpec((TB, ncols), lambda i: (i, 0))

    def resident_spec(arr):
        return pl.BlockSpec(arr.shape, lambda i: (0, 0))

    in_specs = [batch_spec(din_p), batch_spec(dout_p)] + \
               [resident_spec(a) for a in args[2:]]

    out = pl.pallas_call(
        partial(ppo_forward_kernel, output_dim=output_dim),
        out_shape=jax.ShapeDtypeStruct((B_pad, dout_p), jnp.float32),
        grid_spec=pltpu.PrefetchScalarGridSpec(
            num_scalar_prefetch=0,
            grid=(B_pad // TB,),
            in_specs=in_specs,
            out_specs=batch_spec(dout_p),
        ),
        compiler_params=pltpu.CompilerParams(
            dimension_semantics=("parallel",)),
    )(*args)

    policy = out[:B, :output_dim]
    value = out[:B, output_dim:output_dim + 1]
    return policy, value


def _reference_forward(x, action_mask, p):
    """Pure-JAX reference mirroring the PyTorch forward (sanity check)."""
    h = jnp.maximum(x @ p["w1"] + p["b1"], 0.0)
    h = jnp.maximum(h @ p["w2"] + p["b2"], 0.0)
    h = jnp.maximum(h @ p["w3"] + p["b3"], 0.0)
    h = jnp.maximum(h @ p["w4"] + p["b4"], 0.0)
    h = h / jnp.maximum(jnp.sqrt(jnp.sum(h * h, -1, keepdims=True)), 1e-12)
    logits = h @ p["wp"] + p["bp"]
    masked = jnp.where(action_mask == 0, -jnp.inf, logits)
    pol = jax.nn.softmax(masked, axis=-1)
    pol = jnp.clip(pol, 1e-7, 1.0)
    pol = pol / jnp.sum(pol, -1, keepdims=True)
    val = h @ p["wv"] + p["bv"]
    return pol, val


if __name__ == "__main__":
    # Small, module-consistent shapes.
    batch, input_dim, hidden_dim, output_dim = 8, 16, 32, 8

    key = jax.random.PRNGKey(0)
    k_x, k_m, k_p = jax.random.split(key, 3)

    x = jax.random.normal(k_x, (batch, input_dim), dtype=jnp.float32)
    # Binary action mask with at least one valid action per row.
    mask = (jax.random.uniform(k_m, (batch, output_dim)) > 0.3).astype(jnp.float32)
    mask = mask.at[:, 0].set(1.0)

    params = init_params(k_p, input_dim, hidden_dim, output_dim)
    padded_params = pad_and_fuse_params(params, input_dim, hidden_dim, output_dim)

    policy, value = ppo_forward(x, mask, padded_params, output_dim=output_dim)
    jax.block_until_ready((policy, value))

    # Sanity check against the pure-JAX reference (unpadded params).
    ref_policy, ref_value = _reference_forward(x, mask, params)
    assert policy.shape == (batch, output_dim)
    assert value.shape == (batch, 1)
    assert jnp.allclose(policy, ref_policy, atol=1e-5, rtol=1e-5)
    assert jnp.allclose(value, ref_value, atol=1e-5, rtol=1e-5)
    assert jnp.allclose(jnp.sum(policy, axis=-1), 1.0, atol=1e-5)

    print("KERNEL_OK")
</pallas_src>

<mosaic_0001>
module attributes {stable_mosaic.version = 11 : i64} {
  func.func @ppo_forward_kernel(%arg0: i32, %arg1: memref<8x128xf32, #tpu.memory_space<vmem>>, %arg2: memref<8x128xf32, #tpu.memory_space<vmem>>, %arg3: memref<128x128xf32, #tpu.memory_space<vmem>>, %arg4: memref<1x128xf32, #tpu.memory_space<vmem>>, %arg5: memref<128x128xf32, #tpu.memory_space<vmem>>, %arg6: memref<1x128xf32, #tpu.memory_space<vmem>>, %arg7: memref<128x128xf32, #tpu.memory_space<vmem>>, %arg8: memref<1x128xf32, #tpu.memory_space<vmem>>, %arg9: memref<128x128xf32, #tpu.memory_space<vmem>>, %arg10: memref<1x128xf32, #tpu.memory_space<vmem>>, %arg11: memref<128x128xf32, #tpu.memory_space<vmem>>, %arg12: memref<1x128xf32, #tpu.memory_space<vmem>>, %arg13: memref<8x128xf32, #tpu.memory_space<vmem>>) attributes {dimension_semantics = [#tpu.dimension_semantics<parallel>], iteration_bounds = array<i64: 1>, scalar_prefetch = 0 : i64, scratch_operands = 0 : i64, tpu.core_type = #tpu.core_type<tc>, window_params = [{transform_indices = @transform_0, window_bounds = array<i64: 8, 128>}, {transform_indices = @transform_1, window_bounds = array<i64: 8, 128>}, {pipeline_mode = #tpu.pipeline_mode<synchronous>, transform_indices = @transform_2, window_bounds = array<i64: 128, 128>}, {pipeline_mode = #tpu.pipeline_mode<synchronous>, transform_indices = @transform_3, window_bounds = array<i64: 1, 128>}, {pipeline_mode = #tpu.pipeline_mode<synchronous>, transform_indices = @transform_4, window_bounds = array<i64: 128, 128>}, {pipeline_mode = #tpu.pipeline_mode<synchronous>, transform_indices = @transform_5, window_bounds = array<i64: 1, 128>}, {pipeline_mode = #tpu.pipeline_mode<synchronous>, transform_indices = @transform_6, window_bounds = array<i64: 128, 128>}, {pipeline_mode = #tpu.pipeline_mode<synchronous>, transform_indices = @transform_7, window_bounds = array<i64: 1, 128>}, {pipeline_mode = #tpu.pipeline_mode<synchronous>, transform_indices = @transform_8, window_bounds = array<i64: 128, 128>}, {pipeline_mode = #tpu.pipeline_mode<synchronous>, transform_indices = @transform_9, window_bounds = array<i64: 1, 128>}, {pipeline_mode = #tpu.pipeline_mode<synchronous>, transform_indices = @transform_10, window_bounds = array<i64: 128, 128>}, {pipeline_mode = #tpu.pipeline_mode<synchronous>, transform_indices = @transform_11, window_bounds = array<i64: 1, 128>}, {transform_indices = @transform_12, window_bounds = array<i64: 8, 128>}]} {
    %c0 = arith.constant 0 : index
    %c0_0 = arith.constant 0 : index
    %0 = vector.load %arg1[%c0, %c0_0] : memref<8x128xf32, #tpu.memory_space<vmem>>, vector<8x128xf32>
    %c0_1 = arith.constant 0 : index
    %c0_2 = arith.constant 0 : index
    %1 = vector.load %arg3[%c0_1, %c0_2] : memref<128x128xf32, #tpu.memory_space<vmem>>, vector<128x128xf32>
    %cst = arith.constant dense<0.000000e+00> : vector<8x128xf32>
    %2 = tpu.matmul %0, %1, %cst {dimension_numbers = #tpu.dot_dimension_numbers<[1], [0], [0], [1], [0, 0, 1, 1], [], []>} : vector<8x128xf32>, vector<128x128xf32>, vector<8x128xf32> -> vector<8x128xf32>
    %c0_3 = arith.constant 0 : index
    %c0_4 = arith.constant 0 : index
    %3 = vector.load %arg4[%c0_3, %c0_4] : memref<1x128xf32, #tpu.memory_space<vmem>>, vector<1x128xf32>
    %4 = vector.broadcast %3 : vector<1x128xf32> to vector<8x128xf32>
    %5 = arith.addf %2, %4 : vector<8x128xf32>
    %cst_5 = arith.constant 0.000000e+00 : f32
    %6 = vector.broadcast %cst_5 : f32 to vector<8x128xf32>
    %7 = arith.maximumf %5, %6 : vector<8x128xf32>
    %c0_6 = arith.constant 0 : index
    %c0_7 = arith.constant 0 : index
    %8 = vector.load %arg5[%c0_6, %c0_7] : memref<128x128xf32, #tpu.memory_space<vmem>>, vector<128x128xf32>
    %cst_8 = arith.constant dense<0.000000e+00> : vector<8x128xf32>
    %9 = tpu.matmul %7, %8, %cst_8 {dimension_numbers = #tpu.dot_dimension_numbers<[1], [0], [0], [1], [0, 0, 1, 1], [], []>} : vector<8x128xf32>, vector<128x128xf32>, vector<8x128xf32> -> vector<8x128xf32>
    %c0_9 = arith.constant 0 : index
    %c0_10 = arith.constant 0 : index
    %10 = vector.load %arg6[%c0_9, %c0_10] : memref<1x128xf32, #tpu.memory_space<vmem>>, vector<1x128xf32>
    %11 = vector.broadcast %10 : vector<1x128xf32> to vector<8x128xf32>
    %12 = arith.addf %9, %11 : vector<8x128xf32>
    %cst_11 = arith.constant 0.000000e+00 : f32
    %13 = vector.broadcast %cst_11 : f32 to vector<8x128xf32>
    %14 = arith.maximumf %12, %13 : vector<8x128xf32>
    %c0_12 = arith.constant 0 : index
    %c0_13 = arith.constant 0 : index
    %15 = vector.load %arg7[%c0_12, %c0_13] : memref<128x128xf32, #tpu.memory_space<vmem>>, vector<128x128xf32>
    %cst_14 = arith.constant dense<0.000000e+00> : vector<8x128xf32>
    %16 = tpu.matmul %14, %15, %cst_14 {dimension_numbers = #tpu.dot_dimension_numbers<[1], [0], [0], [1], [0, 0, 1, 1], [], []>} : vector<8x128xf32>, vector<128x128xf32>, vector<8x128xf32> -> vector<8x128xf32>
    %c0_15 = arith.constant 0 : index
    %c0_16 = arith.constant 0 : index
    %17 = vector.load %arg8[%c0_15, %c0_16] : memref<1x128xf32, #tpu.memory_space<vmem>>, vector<1x128xf32>
    %18 = vector.broadcast %17 : vector<1x128xf32> to vector<8x128xf32>
    %19 = arith.addf %16, %18 : vector<8x128xf32>
    %cst_17 = arith.constant 0.000000e+00 : f32
    %20 = vector.broadcast %cst_17 : f32 to vector<8x128xf32>
    %21 = arith.maximumf %19, %20 : vector<8x128xf32>
    %c0_18 = arith.constant 0 : index
    %c0_19 = arith.constant 0 : index
    %22 = vector.load %arg9[%c0_18, %c0_19] : memref<128x128xf32, #tpu.memory_space<vmem>>, vector<128x128xf32>
    %cst_20 = arith.constant dense<0.000000e+00> : vector<8x128xf32>
    %23 = tpu.matmul %21, %22, %cst_20 {dimension_numbers = #tpu.dot_dimension_numbers<[1], [0], [0], [1], [0, 0, 1, 1], [], []>} : vector<8x128xf32>, vector<128x128xf32>, vector<8x128xf32> -> vector<8x128xf32>
    %c0_21 = arith.constant 0 : index
    %c0_22 = arith.constant 0 : index
    %24 = vector.load %arg10[%c0_21, %c0_22] : memref<1x128xf32, #tpu.memory_space<vmem>>, vector<1x128xf32>
    %25 = vector.broadcast %24 : vector<1x128xf32> to vector<8x128xf32>
    %26 = arith.addf %23, %25 : vector<8x128xf32>
    %cst_23 = arith.constant 0.000000e+00 : f32
    %27 = vector.broadcast %cst_23 : f32 to vector<8x128xf32>
    %28 = arith.maximumf %26, %27 : vector<8x128xf32>
    %29 = arith.mulf %28, %28 : vector<8x128xf32>
    %cst_24 = arith.constant dense<0.000000e+00> : vector<8xf32>
    %30 = vector.multi_reduction <add>, %29, %cst_24 [1] : vector<8x128xf32> to vector<8xf32>
    %31 = vector.shape_cast %30 : vector<8xf32> to vector<8x1xf32>
    %cst_25 = arith.constant 1.000000e-24 : f32
    %32 = vector.broadcast %cst_25 : f32 to vector<8x1xf32>
    %33 = arith.maximumf %31, %32 : vector<8x1xf32>
    %34 = math.rsqrt %33 : vector<8x1xf32>
    %35 = vector.broadcast %34 : vector<8x1xf32> to vector<8x128xf32>
    %36 = arith.mulf %28, %35 : vector<8x128xf32>
    %c0_26 = arith.constant 0 : index
    %c0_27 = arith.constant 0 : index
    %37 = vector.load %arg11[%c0_26, %c0_27] : memref<128x128xf32, #tpu.memory_space<vmem>>, vector<128x128xf32>
    %cst_28 = arith.constant dense<0.000000e+00> : vector<8x128xf32>
    %38 = tpu.matmul %36, %37, %cst_28 {dimension_numbers = #tpu.dot_dimension_numbers<[1], [0], [0], [1], [0, 0, 1, 1], [], []>} : vector<8x128xf32>, vector<128x128xf32>, vector<8x128xf32> -> vector<8x128xf32>
    %c0_29 = arith.constant 0 : index
    %c0_30 = arith.constant 0 : index
    %39 = vector.load %arg12[%c0_29, %c0_30] : memref<1x128xf32, #tpu.memory_space<vmem>>, vector<1x128xf32>
    %40 = vector.broadcast %39 : vector<1x128xf32> to vector<8x128xf32>
    %41 = arith.addf %38, %40 : vector<8x128xf32>
    %42 = tpu.iota {dimensions = array<i32: 1>} : vector<8x128xi32>
    %c8_i32 = arith.constant 8 : i32
    %43 = vector.broadcast %c8_i32 : i32 to vector<8x128xi32>
    %44 = arith.cmpi slt, %42, %43 : vector<8x128xi32>
    %c8_i32_31 = arith.constant 8 : i32
    %45 = vector.broadcast %c8_i32_31 : i32 to vector<8x128xi32>
    %46 = arith.cmpi eq, %42, %45 : vector<8x128xi32>
    %c0_32 = arith.constant 0 : index
    %c0_33 = arith.constant 0 : index
    %47 = vector.load %arg2[%c0_32, %c0_33] : memref<8x128xf32, #tpu.memory_space<vmem>>, vector<8x128xf32>
    %cst_34 = arith.constant 0.000000e+00 : f32
    %48 = vector.broadcast %cst_34 : f32 to vector<8x128xf32>
    %49 = arith.cmpf one, %47, %48 : vector<8x128xf32>
    %50 = arith.andi %44, %49 : vector<8x128xi1>
    %cst_35 = arith.constant -1.000000e+30 : f32
    %51 = vector.broadcast %cst_35 : f32 to vector<8x128xf32>
    %52 = arith.select %50, %41, %51 : vector<8x128xi1>, vector<8x128xf32>
    %cst_36 = arith.constant dense<0xFF800000> : vector<8xf32>
    %53 = vector.multi_reduction <maximumf>, %52, %cst_36 [1] : vector<8x128xf32> to vector<8xf32>
    %54 = vector.shape_cast %53 : vector<8xf32> to vector<8x1xf32>
    %55 = vector.broadcast %54 : vector<8x1xf32> to vector<8x128xf32>
    %56 = arith.subf %52, %55 : vector<8x128xf32>
    %57 = math.exp %56 : vector<8x128xf32>
    %cst_37 = arith.constant dense<0.000000e+00> : vector<8xf32>
    %58 = vector.multi_reduction <add>, %57, %cst_37 [1] : vector<8x128xf32> to vector<8xf32>
    %59 = vector.shape_cast %58 : vector<8xf32> to vector<8x1xf32>
    %60 = tpu.reciprocal %59 : vector<8x1xf32> -> vector<8x1xf32>
    %61 = vector.broadcast %60 : vector<8x1xf32> to vector<8x128xf32>
    %62 = arith.mulf %57, %61 : vector<8x128xf32>
    %cst_38 = arith.constant 1.000000e-07 : f32
    %cst_39 = arith.constant 1.000000e+00 : f32
    %63 = vector.broadcast %cst_38 : f32 to vector<8x128xf32>
    %64 = arith.maximumf %63, %62 : vector<8x128xf32>
    %65 = vector.broadcast %cst_39 : f32 to vector<8x128xf32>
    %66 = arith.minimumf %65, %64 : vector<8x128xf32>
    %cst_40 = arith.constant 0.000000e+00 : f32
    %67 = vector.broadcast %cst_40 : f32 to vector<8x128xf32>
    %68 = arith.select %44, %66, %67 : vector<8x128xi1>, vector<8x128xf32>
    %cst_41 = arith.constant dense<0.000000e+00> : vector<8xf32>
    %69 = vector.multi_reduction <add>, %68, %cst_41 [1] : vector<8x128xf32> to vector<8xf32>
    %70 = vector.shape_cast %69 : vector<8xf32> to vector<8x1xf32>
    %71 = tpu.reciprocal %70 : vector<8x1xf32> -> vector<8x1xf32>
    %72 = vector.broadcast %71 : vector<8x1xf32> to vector<8x128xf32>
    %73 = arith.mulf %68, %72 : vector<8x128xf32>
    %cst_42 = arith.constant 0.000000e+00 : f32
    %74 = vector.broadcast %cst_42 : f32 to vector<8x128xf32>
    %75 = arith.select %46, %41, %74 : vector<8x128xi1>, vector<8x128xf32>
    %76 = arith.addf %73, %75 : vector<8x128xf32>
    %c0_43 = arith.constant 0 : index
    %c0_44 = arith.constant 0 : index
    %77 = vector.load %arg13[%c0_43, %c0_44] : memref<8x128xf32, #tpu.memory_space<vmem>>, vector<8x128xf32>
    tpu.vector_store %arg13[%c0_43, %c0_44], %76 {strides = array<i32>} : memref<8x128xf32, #tpu.memory_space<vmem>>, vector<8x128xf32>,
    return
  }
  func.func @transform_0(%arg0: i32) -> (i32, i32) {
    %c0_i32 = arith.constant 0 : i32
    %c0_i32_0 = arith.constant 0 : i32
    return %arg0, %c0_i32 : i32, i32
  }
  func.func @transform_1(%arg0: i32) -> (i32, i32) {
    %c0_i32 = arith.constant 0 : i32
    %c0_i32_0 = arith.constant 0 : i32
    return %arg0, %c0_i32 : i32, i32
  }
  func.func @transform_2(%arg0: i32) -> (i32, i32) {
    %c0_i32 = arith.constant 0 : i32
    %c0_i32_0 = arith.constant 0 : i32
    %c0_i32_1 = arith.constant 0 : i32
    return %c0_i32, %c0_i32_0 : i32, i32
  }
  func.func @transform_3(%arg0: i32) -> (i32, i32) {
    %c0_i32 = arith.constant 0 : i32
    %c0_i32_0 = arith.constant 0 : i32
    %c0_i32_1 = arith.constant 0 : i32
    return %c0_i32, %c0_i32_0 : i32, i32
  }
  func.func @transform_4(%arg0: i32) -> (i32, i32) {
    %c0_i32 = arith.constant 0 : i32
    %c0_i32_0 = arith.constant 0 : i32
    %c0_i32_1 = arith.constant 0 : i32
    return %c0_i32, %c0_i32_0 : i32, i32
  }
  func.func @transform_5(%arg0: i32) -> (i32, i32) {
    %c0_i32 = arith.constant 0 : i32
    %c0_i32_0 = arith.constant 0 : i32
    %c0_i32_1 = arith.constant 0 : i32
    return %c0_i32, %c0_i32_0 : i32, i32
  }
  func.func @transform_6(%arg0: i32) -> (i32, i32) {
    %c0_i32 = arith.constant 0 : i32
    %c0_i32_0 = arith.constant 0 : i32
    %c0_i32_1 = arith.constant 0 : i32
    return %c0_i32, %c0_i32_0 : i32, i32
  }
  func.func @transform_7(%arg0: i32) -> (i32, i32) {
    %c0_i32 = arith.constant 0 : i32
    %c0_i32_0 = arith.constant 0 : i32
    %c0_i32_1 = arith.constant 0 : i32
    return %c0_i32, %c0_i32_0 : i32, i32
  }
  func.func @transform_8(%arg0: i32) -> (i32, i32) {
    %c0_i32 = arith.constant 0 : i32
    %c0_i32_0 = arith.constant 0 : i32
    %c0_i32_1 = arith.constant 0 : i32
    return %c0_i32, %c0_i32_0 : i32, i32
  }
  func.func @transform_9(%arg0: i32) -> (i32, i32) {
    %c0_i32 = arith.constant 0 : i32
    %c0_i32_0 = arith.constant 0 : i32
    %c0_i32_1 = arith.constant 0 : i32
    return %c0_i32, %c0_i32_0 : i32, i32
  }
  func.func @transform_10(%arg0: i32) -> (i32, i32) {
    %c0_i32 = arith.constant 0 : i32
    %c0_i32_0 = arith.constant 0 : i32
    %c0_i32_1 = arith.constant 0 : i32
    return %c0_i32, %c0_i32_0 : i32, i32
  }
  func.func @transform_11(%arg0: i32) -> (i32, i32) {
    %c0_i32 = arith.constant 0 : i32
    %c0_i32_0 = arith.constant 0 : i32
    %c0_i32_1 = arith.constant 0 : i32
    return %c0_i32, %c0_i32_0 : i32, i32
  }
  func.func @transform_12(%arg0: i32) -> (i32, i32) {
    %c0_i32 = arith.constant 0 : i32
    %c0_i32_0 = arith.constant 0 : i32
    return %arg0, %c0_i32 : i32, i32
  }
}

</mosaic_0001>

<bundles_post_ra>
// kernel: tpu_custom_call.1
= control target key start
LH: loop header
LB: loop body
LE: loop exit
PB: predicated region body
PF: predicated region fallthrough
CT: control target
= control target key end

     0   :  { %17 = vsyncpa [#allocation3], 0  ;;  %s1502_s0 = inlined_call_operand.hbm [shape: f32[8,128], index: 0, kind: input, shape index: {}]   ;;  %s1503_s1 = inlined_call_operand.hbm [shape: f32[8,128], index: 1, kind: input, shape index: {}]   ;;  %s1504_s2 = inlined_call_operand.hbm [shape: f32[128,128], index: 2, kind: input, shape index: {}]   ;;  %s1505_s3 = inlined_call_operand.vmem [shape: f32[1,128], index: 3, kind: input, shape index: {}]   ;;  %s1506_s4 = inlined_call_operand.hbm [shape: f32[128,128], index: 4, kind: input, shape index: {}]   ;;  %s1507_s5 = inlined_call_operand.vmem [shape: f32[1,128], index: 5, kind: input, shape index: {}]   ;;  %s1508_s6 = inlined_call_operand.hbm [shape: f32[128,128], index: 6, kind: input, shape index: {}]   ;;  %s1509_s7 = inlined_call_operand.vmem [shape: f32[1,128], index: 7, kind: input, shape index: {}]   ;;  %s1510_s8 = inlined_call_operand.hbm [shape: f32[128,128], index: 8, kind: input, shape index: {}]   ;;  %s1511_s9 = inlined_call_operand.vmem [shape: f32[1,128], index: 9, kind: input, shape index: {}]   ;;  %s1512_s10 = inlined_call_operand.hbm [shape: f32[128,128], index: 10, kind: input, shape index: {}]   ;;  %s1513_s11 = inlined_call_operand.vmem [shape: f32[1,128], index: 11, kind: input, shape index: {}]   ;;  %s1514_s12 = inlined_call_operand.hbm [shape: f32[8,128], index: 12, kind: output, shape index: {}]  }
   0x1   :  { %18 = vsyncpa [#allocation6], 0 }
   0x2   :  { %19 = vsyncpa [#allocation9], 0 }
   0x3   :  { %20 = vsyncpa [#allocation12], 0 }
   0x4   :  { %21 = vsyncpa [#allocation4], 0  ;;  %s1246_s21 = smov [#allocation5]   ;;  %s1060_s25 = scalar_lea.hbm %s1503_s1, 128 }
   0x5   :  { %s38_s22 = sshll.u32 %s1246_s21, 4  ;;  %p1061_p0 = scmp.ne.s32.totalorder %s1503_s1, %s1060_s25  ;;  %s39_s22 = int_to_ptr.vmem [resolvable:$true] %s38_s22 }
   0x6   :  { %p1064_p1 = scmp.lt.u32.totalorder %s1060_s25, %s1503_s1 }
   0x8   :  { %p1066_p2 = pnand %p1064_p1, %p1061_p0 }
   0xa   :  { %1069 = shalt.err (!%p1066_p2)
}
   0xb   :  { %s1070_s30 = scalar_lea.vmem %s39_s22, 128  ;;  %p1075_p4 = scmp.lt.s32.totalorder %s39_s22, %s39_s22 }
   0xc   :  { %p1071_p3 = scmp.ne.s32.totalorder %s39_s22, %s1070_s30  ;;  %p1076_p5 = scmp.lt.s32.totalorder %s1070_s30, %s1070_s30 }
   0xe   :  { %p1077_p6 = por %p1076_p5, %p1075_p4 }
  0x10   :  { %p1078_p7 = pnand %p1077_p6, %p1071_p3 }
  0x12   :  { %1081 = shalt.err (!%p1078_p7)
}
  0x13   :  { %41 = dma.hbm_to_vmem [thread:$0]  %s1503_s1, 128, %s39_s22, [#allocation6]  }
  0x14   :  { %s1247_s15 = smov [#allocation8]   ;;  %s1248_s17 = smov [#allocation11]  }
  0x15   :  { %s61_s16 = sshll.u32 %s1247_s15, 4  ;;  %s89_s18 = sshll.u32 %s1248_s17, 4  ;;  %s62_s16 = int_to_ptr.vmem [resolvable:$true] %s61_s16  ;;  %s90_s18 = int_to_ptr.vmem [resolvable:$true] %s89_s18 }
  0x16   :  { %s1082_s21 = scalar_lea.hbm %s1506_s4, 2048 }
  0x17   :  { %p1083_p8 = scmp.ne.s32.totalorder %s1506_s4, %s1082_s21  ;;  %p1086_p9 = scmp.lt.u32.totalorder %s1082_s21, %s1506_s4 }
  0x19   :  { %p1088_p10 = pnand %p1086_p9, %p1083_p8 }
  0x1b   :  { %1091 = shalt.err (!%p1088_p10)
}
  0x1c   :  { %s1092_s1 = scalar_lea.vmem %s62_s16, 2048  ;;  %p1097_p12 = scmp.lt.s32.totalorder %s62_s16, %s62_s16 }
  0x1d   :  { %p1093_p11 = scmp.ne.s32.totalorder %s62_s16, %s1092_s1  ;;  %p1098_p13 = scmp.lt.s32.totalorder %s1092_s1, %s1092_s1 }
  0x1f   :  { %p1099_p0 = por %p1098_p13, %p1097_p12 }
  0x21   :  { %p1100_p1 = pnand %p1099_p0, %p1093_p11 }
  0x23   :  { %1103 = shalt.err (!%p1100_p1)
}
  0x24   :  { %s1249_s22 = smov 128   ;;  %s1250_s27 = smov 8  }
  0x25   :  { %67 = dma.hbm_to_vmem [thread:$0]  %s1506_s4, 2048, %s62_s16, [#allocation9], %s1249_s22, %s1249_s22, %s1250_s27  }
  0x26   :  { %s1104_s14 = scalar_lea.hbm %s1510_s8, 2048 }
  0x27   :  { %p1105_p2 = scmp.ne.s32.totalorder %s1510_s8, %s1104_s14  ;;  %p1108_p3 = scmp.lt.u32.totalorder %s1104_s14, %s1510_s8 }
  0x29   :  { %p1110_p4 = pnand %p1108_p3, %p1105_p2 }
  0x2b   :  { %1113 = shalt.err (!%p1110_p4)
}
  0x2c   :  { %s1114_s21 = scalar_lea.vmem %s90_s18, 2048  ;;  %p1119_p6 = scmp.lt.s32.totalorder %s90_s18, %s90_s18 }
  0x2d   :  { %p1115_p5 = scmp.ne.s32.totalorder %s90_s18, %s1114_s21  ;;  %p1120_p7 = scmp.lt.s32.totalorder %s1114_s21, %s1114_s21 }
  0x2f   :  { %p1121_p8 = por %p1120_p7, %p1119_p6 }
  0x31   :  { %p1122_p9 = pnand %p1121_p8, %p1115_p5 }
  0x33   :  { %1125 = shalt.err (!%p1122_p9)
}
  0x34   :  { %95 = dma.hbm_to_vmem [thread:$0]  %s1510_s8, 2048, %s90_s18, [#allocation12], %s1249_s22, %s1249_s22, %s1250_s27  }
  0x35   :  { %s1251_s23 = smov [#allocation2]   ;;  %s1252_s25 = smov [#allocation7]  }
  0x36   :  { %s28_s24 = sshll.u32 %s1251_s23, 4  ;;  %s47_s26 = sshll.u32 %s1252_s25, 4  ;;  %s29_s24 = int_to_ptr.vmem [resolvable:$true] %s28_s24  ;;  %s48_s26 = int_to_ptr.vmem [resolvable:$true] %s47_s26 }
  0x37   :  { %s1126_s29 = scalar_lea.hbm %s1502_s0, 128 }
  0x38   :  { %p1127_p10 = scmp.ne.s32.totalorder %s1502_s0, %s1126_s29  ;;  %p1130_p11 = scmp.lt.u32.totalorder %s1126_s29, %s1502_s0 }
  0x3a   :  { %p1132_p12 = pnand %p1130_p11, %p1127_p10 }
  0x3c   :  { %1135 = shalt.err (!%p1132_p12)
}
  0x3d   :  { %s1136_s8 = scalar_lea.vmem %s29_s24, 128  ;;  %p1141_p0 = scmp.lt.s32.totalorder %s29_s24, %s29_s24 }
  0x3e   :  { %p1137_p13 = scmp.ne.s32.totalorder %s29_s24, %s1136_s8  ;;  %p1142_p1 = scmp.lt.s32.totalorder %s1136_s8, %s1136_s8 }
  0x40   :  { %p1143_p2 = por %p1142_p1, %p1141_p0 }
  0x42   :  { %p1144_p3 = pnand %p1143_p2, %p1137_p13 }
  0x44   :  { %1147 = shalt.err (!%p1144_p3)
}
  0x45   :  { %31 = dma.hbm_to_vmem [thread:$0]  %s1502_s0, 128, %s29_s24, [#allocation3]  }
  0x46   :  { %s1148_s21 = scalar_lea.hbm %s1504_s2, 2048 }
  0x47   :  { %p1149_p4 = scmp.ne.s32.totalorder %s1504_s2, %s1148_s21  ;;  %p1152_p5 = scmp.lt.u32.totalorder %s1148_s21, %s1504_s2 }
  0x49   :  { %p1154_p6 = pnand %p1152_p5, %p1149_p4 }
  0x4b   :  { %1157 = shalt.err (!%p1154_p6)
}
  0x4c   :  { %s1158_s1 = scalar_lea.vmem %s48_s26, 2048  ;;  %p1163_p8 = scmp.lt.s32.totalorder %s48_s26, %s48_s26 }
  0x4d   :  { %p1159_p7 = scmp.ne.s32.totalorder %s48_s26, %s1158_s1  ;;  %p1164_p9 = scmp.lt.s32.totalorder %s1158_s1, %s1158_s1 }
  0x4f   :  { %p1165_p10 = por %p1164_p9, %p1163_p8 }
  0x51   :  { %p1166_p11 = pnand %p1165_p10, %p1159_p7 }
  0x53   :  { %1169 = shalt.err (!%p1166_p11)
}
  0x54   :  { %53 = dma.hbm_to_vmem [thread:$0]  %s1504_s2, 2048, %s48_s26, [#allocation6], %s1249_s22, %s1249_s22, %s1250_s27  }
  0x55   :  { %s1253_s28 = smov [#allocation10]   ;;  %s1254_s30 = smov [#allocation13]  }
  0x56   :  { %s75_s29 = sshll.u32 %s1253_s28, 4  ;;  %s103_s13 = sshll.u32 %s1254_s30, 4  ;;  %s76_s29 = int_to_ptr.vmem [resolvable:$true] %s75_s29  ;;  %s104_s13 = int_to_ptr.vmem [resolvable:$true] %s103_s13 }
  0x57   :  { %s1170_s8 = scalar_lea.hbm %s1508_s6, 2048 }
  0x58   :  { %p1171_p12 = scmp.ne.s32.totalorder %s1508_s6, %s1170_s8  ;;  %p1174_p13 = scmp.lt.u32.totalorder %s1170_s8, %s1508_s6 }
  0x5a   :  { %p1176_p0 = pnand %p1174_p13, %p1171_p12 }
  0x5c   :  { %1179 = shalt.err (!%p1176_p0)
}
  0x5d   :  { %s1180_s2 = scalar_lea.vmem %s76_s29, 2048  ;;  %p1185_p2 = scmp.lt.s32.totalorder %s76_s29, %s76_s29 }
  0x5e   :  { %p1181_p1 = scmp.ne.s32.totalorder %s76_s29, %s1180_s2  ;;  %p1186_p3 = scmp.lt.s32.totalorder %s1180_s2, %s1180_s2 }
  0x60   :  { %p1187_p4 = por %p1186_p3, %p1185_p2 }
  0x62   :  { %p1188_p5 = pnand %p1187_p4, %p1181_p1 }
  0x64   :  { %1191 = shalt.err (!%p1188_p5)
}
  0x65   :  { %81 = dma.hbm_to_vmem [thread:$0]  %s1508_s6, 2048, %s76_s29, [#allocation9], %s1249_s22, %s1249_s22, %s1250_s27  }
  0x66   :  { %s1192_s23 = scalar_lea.hbm %s1512_s10, 2048 }
  0x67   :  { %p1193_p6 = scmp.ne.s32.totalorder %s1512_s10, %s1192_s23  ;;  %p1196_p7 = scmp.lt.u32.totalorder %s1192_s23, %s1512_s10 }
  0x69   :  { %p1198_p8 = pnand %p1196_p7, %p1193_p6 }
  0x6b   :  { %1201 = shalt.err (!%p1198_p8)
}
  0x6c   :  { %s1202_s28 = scalar_lea.vmem %s104_s13, 2048  ;;  %p1207_p10 = scmp.lt.s32.totalorder %s104_s13, %s104_s13 }
  0x6d   :  { %p1203_p9 = scmp.ne.s32.totalorder %s104_s13, %s1202_s28  ;;  %p1208_p11 = scmp.lt.s32.totalorder %s1202_s28, %s1202_s28 }
  0x6f   :  { %p1209_p12 = por %p1208_p11, %p1207_p10 }
  0x71   :  { %p1210_p13 = pnand %p1209_p12, %p1203_p9 }
  0x73   :  { %1213 = shalt.err (!%p1210_p13)
}
  0x74   :  { %109 = dma.hbm_to_vmem [thread:$0]  %s1512_s10, 2048, %s104_s13, [#allocation12], %s1249_s22, %s1249_s22, %s1250_s27  }
  0x75   :  { %1236 = dma.done.wait [#allocation3], 128  }
  0x76   :  { %1237 = vsyncadd [#allocation3], 4294967168 }
  0x77   :  { %1238 = dma.done.wait [#allocation6], 2176  }
  0x78   :  { %1239 = vsyncadd [#allocation6], 4294965120 }
  0x79   :  { %1240 = dma.done.wait [#allocation9], 4096  }
  0x7a   :  { %1241 = vsyncadd [#allocation9], 4294963200 }
  0x7b   :  { %1242 = dma.done.wait [#allocation12], 4096  }
  0x7c   :  { %1243 = vsyncadd [#allocation12], 4294963200  ;;  %v1255_v0 = vmov 0.0|0.0   ;;  %vm1256_vm0 = vmmov 0   ;;  %v1257_v1 = vmov 0.0   ;;  %v134_v2 = vld [vmem:[#allocation7] sm:$0xff] }
  0x7d   :  { %919 = vmatprep.subr.bf16.mxu0 %v1255_v0  ;;  %776 = vmatprep.mubr.msk.f32.mxu0 %vm1256_vm0, %v1257_v1  ;;  %v135_v3 = vld [vmem:[#allocation7 + $0x8] sm:$0xff]  ;;  %v136_v4 = vld [vmem:[#allocation7 + $0x10] sm:$0xff]  ;;  %v137_v6 = vld [vmem:[#allocation7 + $0x18] sm:$0xff] }
  0x7e   :  { %943 = vmatprep.subr.bf16.mxu1 %v1255_v0  ;;  %811 = vmatprep.mubr.msk.f32.mxu1 %vm1256_vm0, %v1257_v1  ;;  %v920_v5 = vpack.c.bf16 %v135_v3, %v134_v2  ;;  %v923_v7 = vpack.c.bf16 %v137_v6, %v136_v4  ;;  %v138_v8 = vld [vmem:[#allocation7 + $0x20] sm:$0xff]  ;;  %v139_v9 = vld [vmem:[#allocation7 + $0x28] sm:$0xff]  ;;  %v230_v12 = vld [vmem:[#allocation8 + $0x10] sm:$0xff] }
  0x7f   :  { %v228_v10 = vld [vmem:[#allocation8] sm:$0xff]  ;;  %v229_v11 = vld [vmem:[#allocation8 + $0x8] sm:$0xff]  ;;  %v231_v13 = vld [vmem:[#allocation8 + $0x18] sm:$0xff]  ;;  %v926_v14 = vpack.c.bf16 %v139_v9, %v138_v8 }
  0x80   :  { %921 = vmatpush3.bf16.msra.mxu0 %v920_v5  ;;  %v944_v15 = vpack.c.bf16 %v229_v11, %v228_v10  ;;  %v140_v16 = vld [vmem:[#allocation7 + $0x30] sm:$0xff]  ;;  %v141_v17 = vld [vmem:[#allocation7 + $0x38] sm:$0xff]  ;;  %v947_v18 = vpack.c.bf16 %v231_v13, %v230_v12  ;;  %v232_v19 = vld [vmem:[#allocation8 + $0x20] sm:$0xff] }
  0x81   :  { %922 = vmatprep.subr.bf16.mxu0 %v1255_v0  ;;  %v233_v20 = vld [vmem:[#allocation8 + $0x28] sm:$0xff]  ;;  %v929_v21 = vpack.c.bf16 %v141_v17, %v140_v16  ;;  %v142_v22 = vld [vmem:[#allocation7 + $0x40] sm:$0xff]  ;;  %v234_v25 = vld [vmem:[#allocation8 + $0x30] sm:$0xff] }
  0x82   :  { %945 = vmatpush3.bf16.msra.mxu1 %v944_v15  ;;  %v143_v23 = vld [vmem:[#allocation7 + $0x48] sm:$0xff]  ;;  %v950_v24 = vpack.c.bf16 %v233_v20, %v232_v19  ;;  %v235_v26 = vld [vmem:[#allocation8 + $0x38] sm:$0xff]  ;;  %v144_v28 = vld [vmem:[#allocation7 + $0x50] sm:$0xff] }
  0x83   :  { %946 = vmatprep.subr.bf16.mxu1 %v1255_v0  ;;  %v932_v27 = vpack.c.bf16 %v143_v23, %v142_v22  ;;  %v145_v29 = vld [vmem:[#allocation7 + $0x58] sm:$0xff]  ;;  %v953_v30 = vpack.c.bf16 %v235_v26, %v234_v25  ;;  %v236_v31 = vld [vmem:[#allocation8 + $0x40] sm:$0xff]  ;;  %v237_v32 = vld [vmem:[#allocation8 + $0x48] sm:$0xff] }
  0x84   :  { %924 = vmatpush3.bf16.msra.mxu0 %v923_v7  ;;  %v935_v33 = vpack.c.bf16 %v145_v29, %v144_v28  ;;  %v146_v34 = vld [vmem:[#allocation7 + $0x60] sm:$0xff]  ;;  %v147_v35 = vld [vmem:[#allocation7 + $0x68] sm:$0xff]  ;;  %v956_v36 = vpack.c.bf16 %v237_v32, %v236_v31  ;;  %v238_v37 = vld [vmem:[#allocation8 + $0x50] sm:$0xff] }
  0x85   :  { %925 = vmatprep.subr.bf16.mxu0 %v1255_v0  ;;  %v239_v38 = vld [vmem:[#allocation8 + $0x58] sm:$0xff]  ;;  %v938_v39 = vpack.c.bf16 %v147_v35, %v146_v34  ;;  %v148_v40 = vld [vmem:[#allocation7 + $0x70] sm:$0xff]  ;;  %v240_v43 = vld [vmem:[#allocation8 + $0x60] sm:$0xff] }
  0x86   :  { %948 = vmatpush3.bf16.msra.mxu1 %v947_v18  ;;  %v149_v41 = vld [vmem:[#allocation7 + $0x78] sm:$0xff]  ;;  %v959_v42 = vpack.c.bf16 %v239_v38, %v238_v37  ;;  %v241_v44 = vld [vmem:[#allocation8 + $0x68] sm:$0xff]  ;;  %v133_v47 = vld [vmem:[#allocation2] sm:$0xff] }
  0x87   :  { %949 = vmatprep.subr.bf16.mxu1 %v1255_v0  ;;  %v941_v45 = vpack.c.bf16 %v149_v41, %v148_v40  ;;  %v962_v46 = vpack.c.bf16 %v241_v44, %v240_v43  ;;  %v242_v48 = vld [vmem:[#allocation8 + $0x70] sm:$0xff]  ;;  %v243_v49 = vld [vmem:[#allocation8 + $0x78] sm:$0xff]  ;;  %v322_v51 = vld [vmem:[#allocation10] sm:$0xff] }
  0x88   :  { %927 = vmatpush3.bf16.msra.mxu0 %v926_v14  ;;  %v965_v50 = vpack.c.bf16 %v243_v49, %v242_v48  ;;  %v323_v52 = vld [vmem:[#allocation10 + $0x8] sm:$0xff]  ;;  %v324_v53 = vld [vmem:[#allocation10 + $0x10] sm:$0xff]  ;;  %v325_v55 = vld [vmem:[#allocation10 + $0x18] sm:$0xff] }
  0x89   :  { %928 = vmatprep.subr.bf16.mxu0 %v1255_v0  ;;  %v968_v54 = vpack.c.bf16 %v323_v52, %v322_v51  ;;  %v971_v56 = vpack.c.bf16 %v325_v55, %v324_v53  ;;  %v326_v57 = vld [vmem:[#allocation10 + $0x20] sm:$0xff]  ;;  %v327_v58 = vld [vmem:[#allocation10 + $0x28] sm:$0xff]  ;;  %v328_v60 = vld [vmem:[#allocation10 + $0x30] sm:$0xff] }
  0x8a   :  { %951 = vmatpush3.bf16.msra.mxu1 %v950_v24  ;;  %v974_v59 = vpack.c.bf16 %v327_v58, %v326_v57  ;;  %v329_v61 = vld [vmem:[#allocation10 + $0x38] sm:$0xff]  ;;  %v330_v63 = vld [vmem:[#allocation10 + $0x40] sm:$0xff]  ;;  %v331_v2 = vld [vmem:[#allocation10 + $0x48] sm:$0xff] }
  0x8b   :  { %952 = vmatprep.subr.bf16.mxu1 %v1255_v0  ;;  %v977_v62 = vpack.c.bf16 %v329_v61, %v328_v60  ;;  %v980_v3 = vpack.c.bf16 %v331_v2, %v330_v63  ;;  %v332_v4 = vld [vmem:[#allocation10 + $0x50] sm:$0xff]  ;;  %v333_v5 = vld [vmem:[#allocation10 + $0x58] sm:$0xff]  ;;  %v334_v7 = vld [vmem:[#allocation10 + $0x60] sm:$0xff] }
  0x8c   :  { %930 = vmatpush3.bf16.msra.mxu0 %v929_v21  ;;  %v983_v6 = vpack.c.bf16 %v333_v5, %v332_v4  ;;  %v335_v8 = vld [vmem:[#allocation10 + $0x68] sm:$0xff]  ;;  %v654_v10 = vld [vmem:[%s1505_s3] ss:$0 sm:$0xff]  ;;  %v337_v16 = vld [vmem:[#allocation10 + $0x78] sm:$0xff] }
  0x8d   :  { %931 = vmatprep.subr.bf16.mxu0 %v1255_v0  ;;  %v986_v9 = vpack.c.bf16 %v335_v8, %v334_v7  ;;  %v336_v15 = vld [vmem:[#allocation10 + $0x70] sm:$0xff]  ;;  %v416_v18 = vld [vmem:[#allocation11] sm:$0xff]  ;;  %v417_v19 = vld [vmem:[#allocation11 + $0x8] sm:$0xff] }
  0x8e   :  { %954 = vmatpush3.bf16.msra.mxu1 %v953_v30  ;;  %v989_v17 = vpack.c.bf16 %v337_v16, %v336_v15  ;;  %v418_v20 = vld [vmem:[#allocation11 + $0x10] sm:$0xff]  ;;  %v992_v21 = vpack.c.bf16 %v417_v19, %v416_v18  ;;  %v419_v22 = vld [vmem:[#allocation11 + $0x18] sm:$0xff]  ;;  %v420_v24 = vld [vmem:[#allocation11 + $0x20] sm:$0xff] }
  0x8f   :  { %955 = vmatprep.subr.bf16.mxu1 %v1255_v0  ;;  %v995_v23 = vpack.c.bf16 %v419_v22, %v418_v20  ;;  %v421_v25 = vld [vmem:[#allocation11 + $0x28] sm:$0xff]  ;;  %v423_v28 = vld [vmem:[#allocation11 + $0x38] sm:$0xff]  ;;  %v424_v30 = vld [vmem:[#allocation11 + $0x40] sm:$0xff] }
  0x90   :  { %933 = vmatpush3.bf16.msra.mxu0 %v932_v27  ;;  %v998_v26 = vpack.c.bf16 %v421_v25, %v420_v24  ;;  %v422_v27 = vld [vmem:[#allocation11 + $0x30] sm:$0xff]  ;;  %v425_v31 = vld [vmem:[#allocation11 + $0x48] sm:$0xff]  ;;  %v427_v34 = vld [vmem:[#allocation11 + $0x58] sm:$0xff] }
  0x91   :  { %934 = vmatprep.subr.bf16.mxu0 %v1255_v0  ;;  %v1001_v29 = vpack.c.bf16 %v423_v28, %v422_v27  ;;  %v1004_v32 = vpack.c.bf16 %v425_v31, %v424_v30  ;;  %v429_v37 = vld [vmem:[#allocation11 + $0x68] sm:$0xff]  ;;  %v430_v44 = vld [vmem:[#allocation11 + $0x70] sm:$0xff]  ;;  %v516_v52 = vld [vmem:[#allocation13] sm:$0xff] }
  0x92   :  { %957 = vmatpush3.bf16.msra.mxu1 %v956_v36  ;;  %v428_v36 = vld [vmem:[#allocation11 + $0x60] sm:$0xff]  ;;  %v517_v53 = vld [vmem:[#allocation13 + $0x8] sm:$0xff]  ;;  %v522_v60 = vld [vmem:[#allocation13 + $0x30] sm:$0xff] }
  0x93   :  { %958 = vmatprep.subr.bf16.mxu1 %v1255_v0  ;;  %v1010_v38 = vpack.c.bf16 %v429_v37, %v428_v36  ;;  %v1016_v55 = vpack.c.bf16 %v517_v53, %v516_v52  ;;  %v520_v57 = vld [vmem:[#allocation13 + $0x20] sm:$0xff]  ;;  %v521_v58 = vld [vmem:[#allocation13 + $0x28] sm:$0xff]  ;;  %v523_v61 = vld [vmem:[#allocation13 + $0x38] sm:$0xff] }
  0x94   :  { %936 = vmatpush3.bf16.msra.mxu0 %v935_v33  ;;  %v426_v33 = vld [vmem:[#allocation11 + $0x50] sm:$0xff]  ;;  %v524_v7 = vld [vmem:[#allocation13 + $0x40] sm:$0xff]  ;;  %v525_v8 = vld [vmem:[#allocation13 + $0x48] sm:$0xff] }
  0x95   :  { %937 = vmatprep.subr.bf16.mxu0 %v1255_v0  ;;  %v1007_v35 = vpack.c.bf16 %v427_v34, %v426_v33  ;;  %v657_v63 = vld [vmem:[%s1511_s9] ss:$0 sm:$0xff]  ;;  %v613_v25 = vld [vmem:[#allocation5] sm:$0xff] }
  0x96   :  { %960 = vmatpush3.bf16.msra.mxu1 %v959_v42  ;;  %v530_v16 = vld [vmem:[#allocation13 + $0x70] sm:$0xff]  ;;  %vm614_vm2 = vcmp.ne.f32.partialorder %v613_v25, 0.0 }
  0x97   :  { %961 = vmatprep.subr.bf16.mxu1 %v1255_v0 }
  0x98   :  { %939 = vmatpush3.bf16.msra.mxu0 %v938_v39  ;;  %v655_v39 = vld [vmem:[%s1507_s5] ss:$0 sm:$0xff] }
  0x99   :  { %940 = vmatprep.subr.bf16.mxu0 %v1255_v0 }
  0x9a   :  { %963 = vmatpush3.bf16.msra.mxu1 %v962_v46 }
  0x9b   :  { %964 = vmatprep.subr.bf16.mxu1 %v1255_v0 }
  0x9c   :  { %942 = vmatpush3.bf16.msra.mxu0 %v941_v45  ;;  %v431_v45 = vld [vmem:[#allocation11 + $0x78] sm:$0xff] }
  0x9d   :  { %967 = vmatprep.subr.bf16.mxu0 %v1255_v0  ;;  %v1013_v46 = vpack.c.bf16 %v431_v45, %v430_v44 }
  0x9e   :  { %966 = vmatpush3.bf16.msra.mxu1 %v965_v50 }
  0x9f   :  { %777 = vmatmul.mubr.f32.vlgmr.msra.gmra.mrb[0].mxu0 %v133_v47  ;;  %991 = vmatprep.subr.bf16.mxu1 %v1255_v0  ;;  %v656_v47 = vld [vmem:[%s1509_s7] ss:$0 sm:$0xff] }
  0xa0   :  { %846 = vmatprep.mubr.msk.f32.mxu0 %vm1256_vm0, %v1257_v1  ;;  %969 = vmatpush3.bf16.msra.mxu0 %v968_v54  ;;  %v518_v54 = vld [vmem:[#allocation13 + $0x10] sm:$0xff] }
  0xa1   :  { %970 = vmatprep.subr.bf16.mxu0 %v1255_v0 }
  0xa4   :  { %972 = vmatpush3.bf16.msra.mxu0 %v971_v56  ;;  %v519_v56 = vld [vmem:[#allocation13 + $0x18] sm:$0xff] }
  0xa5   :  { %973 = vmatprep.subr.bf16.mxu0 %v1255_v0 }
  0xa8   :  { %975 = vmatpush3.bf16.msra.mxu0 %v974_v59  ;;  %v1022_v59 = vpack.c.bf16 %v521_v58, %v520_v57 }
  0xa9   :  { %976 = vmatprep.subr.bf16.mxu0 %v1255_v0 }
  0xac   :  { %978 = vmatpush3.bf16.msra.mxu0 %v977_v62  ;;  %v1025_v62 = vpack.c.bf16 %v523_v61, %v522_v60 }
  0xad   :  { %979 = vmatprep.subr.bf16.mxu0 %v1255_v0 }
  0xb0   :  { %981 = vmatpush3.bf16.msra.mxu0 %v980_v3 }
  0xb1   :  { %982 = vmatprep.subr.bf16.mxu0 %v1255_v0 }
  0xb4   :  { %984 = vmatpush3.bf16.msra.mxu0 %v983_v6 }
  0xb5   :  { %985 = vmatprep.subr.bf16.mxu0 %v1255_v0 }
  0xb8   :  { %987 = vmatpush3.bf16.msra.mxu0 %v986_v9  ;;  %v1028_v9 = vpack.c.bf16 %v525_v8, %v524_v7 }
  0xb9   :  { %988 = vmatprep.subr.bf16.mxu0 %v1255_v0 }
  0xbc   :  { %990 = vmatpush3.bf16.msra.mxu0 %v989_v17  ;;  %v531_v17 = vld [vmem:[#allocation13 + $0x78] sm:$0xff] }
  0xbd   :  { %1015 = vmatprep.subr.bf16.mxu0 %v1255_v0  ;;  %v1037_v18 = vpack.c.bf16 %v531_v17, %v530_v16 }
 0x172   :  { %v223_v11 = vpop.f32.mrb[0].mxu0 }
 0x173   :  { %v224_v12 = vadd.f32 %v654_v10, %v223_v11  ;;  %v778_v13 = vpop.f32.mrb[1].mxu0  ;;  %v526_v10 = vld [vmem:[#allocation13 + $0x50] sm:$0xff]  ;;  %v527_v11 = vld [vmem:[#allocation13 + $0x58] sm:$0xff] }
 0x174   :  { %v528_v13 = vld [vmem:[#allocation13 + $0x60] sm:$0xff] }
 0x175   :  { %v227_v14 = vmax.f32 %v224_v12, 0.0  ;;  %v1031_v12 = vpack.c.bf16 %v527_v11, %v526_v10 }
 0x177   :  { %812 = vmatmul.mubr.f32.vlgmr.msra.gmra.mrb[0].mxu1 %v227_v14  ;;  %v529_v14 = vld [vmem:[#allocation13 + $0x68] sm:$0xff] }
 0x178   :  { %881 = vmatprep.mubr.msk.f32.mxu1 %vm1256_vm0, %v1257_v1  ;;  %993 = vmatpush3.bf16.msra.mxu1 %v992_v21  ;;  %v1034_v15 = vpack.c.bf16 %v529_v14, %v528_v13 }
 0x179   :  { %994 = vmatprep.subr.bf16.mxu1 %v1255_v0 }
 0x17c   :  { %996 = vmatpush3.bf16.msra.mxu1 %v995_v23  ;;  %v609_v23 = vlaneseq }
 0x17d   :  { %997 = vmatprep.subr.bf16.mxu1 %v1255_v0 }
 0x17e   :  { %v610_v24 = vand.u32 127, %v609_v23 }
 0x180   :  { %999 = vmatpush3.bf16.msra.mxu1 %v998_v26  ;;  %vm611_vm1 = vcmp.lt.s32.totalorder %v610_v24, 8  ;;  %v658_v26 = vld [vmem:[%s1513_s11] ss:$0 sm:$0xff]  ;;  %vm612_vm3 = vcmp.eq.s32.totalorder %v610_v24, 8  ;;  %s1258_s11 = smov [#allocation14]  }
 0x181   :  { %1000 = vmatprep.subr.bf16.mxu1 %v1255_v0  ;;  %vm615_vm4 = vmand %vm611_vm1, %vm614_vm2  ;;  %s642_s15 = sshll.u32 %s1258_s11, 4  ;;  %s643_s15 = int_to_ptr.vmem [resolvable:$true] %s642_s15 }
 0x182   :  { %s1214_s8 = scalar_lea.vmem %s643_s15, 128  ;;  %p1219_p1 = scmp.lt.s32.totalorder %s643_s15, %s643_s15 }
 0x183   :  { %p1215_p0 = scmp.ne.s32.totalorder %s643_s15, %s1214_s8  ;;  %p1220_p2 = scmp.lt.s32.totalorder %s1214_s8, %s1214_s8 }
 0x184   :  { %1002 = vmatpush3.bf16.msra.mxu1 %v1001_v29 }
 0x185   :  { %1003 = vmatprep.subr.bf16.mxu1 %v1255_v0  ;;  %p1221_p3 = por %p1220_p2, %p1219_p1 }
 0x187   :  { %p1222_p4 = pnand %p1221_p3, %p1215_p0 }
 0x188   :  { %1005 = vmatpush3.bf16.msra.mxu1 %v1004_v32 }
 0x189   :  { %1006 = vmatprep.subr.bf16.mxu1 %v1255_v0 }
 0x18c   :  { %1008 = vmatpush3.bf16.msra.mxu1 %v1007_v35 }
 0x18d   :  { %1009 = vmatprep.subr.bf16.mxu1 %v1255_v0 }
 0x190   :  { %1011 = vmatpush3.bf16.msra.mxu1 %v1010_v38 }
 0x191   :  { %1012 = vmatprep.subr.bf16.mxu1 %v1255_v0 }
 0x194   :  { %1014 = vmatpush3.bf16.msra.mxu1 %v1013_v46 }
 0x24a   :  { %v317_v40 = vpop.f32.mrb[0].mxu1 }
 0x24b   :  { %v318_v41 = vadd.f32 %v655_v39, %v317_v40  ;;  %v813_v42 = vpop.f32.mrb[1].mxu1 }
 0x24d   :  { %v321_v43 = vmax.f32 %v318_v41, 0.0 }
 0x24f   :  { %847 = vmatmul.mubr.f32.vlgmr.msra.gmra.mrb[2].mxu0 %v321_v43 }
 0x250   :  { %916 = vmatprep.mubr.msk.f32.mxu0 %vm1256_vm0, %v1257_v1  ;;  %1017 = vmatpush3.bf16.msra.mxu0 %v1016_v55  ;;  %v1019_v1 = vpack.c.bf16 %v519_v56, %v518_v54 }
 0x251   :  { %1018 = vmatprep.subr.bf16.mxu0 %v1255_v0 }
 0x254   :  { %1020 = vmatpush3.bf16.msra.mxu0 %v1019_v1 }
 0x255   :  { %1021 = vmatprep.subr.bf16.mxu0 %v1255_v0 }
 0x258   :  { %1023 = vmatpush3.bf16.msra.mxu0 %v1022_v59 }
 0x259   :  { %1024 = vmatprep.subr.bf16.mxu0 %v1255_v0 }
 0x25c   :  { %1026 = vmatpush3.bf16.msra.mxu0 %v1025_v62 }
 0x25d   :  { %1027 = vmatprep.subr.bf16.mxu0 %v1255_v0 }
 0x260   :  { %1029 = vmatpush3.bf16.msra.mxu0 %v1028_v9 }
 0x261   :  { %1030 = vmatprep.subr.bf16.mxu0 %v1255_v0 }
 0x264   :  { %1032 = vmatpush3.bf16.msra.mxu0 %v1031_v12 }
 0x265   :  { %1033 = vmatprep.subr.bf16.mxu0 %v1255_v0 }
 0x268   :  { %1035 = vmatpush3.bf16.msra.mxu0 %v1034_v15 }
 0x269   :  { %1036 = vmatprep.subr.bf16.mxu0 %v1255_v0 }
 0x26c   :  { %1038 = vmatpush3.bf16.msra.mxu0 %v1037_v18 }
 0x322   :  { %v411_v48 = vpop.f32.mrb[2].mxu0 }
 0x323   :  { %v412_v49 = vadd.f32 %v656_v47, %v411_v48  ;;  %v848_v50 = vpop.f32.mrb[3].mxu0 }
 0x325   :  { %v415_v51 = vmax.f32 %v412_v49, 0.0 }
 0x327   :  { %882 = vmatmul.mubr.f32.vlgmr.msra.gmra.mrb[2].mxu1 %v415_v51 }
 0x3fa   :  { %v505_v2 = vpop.f32.mrb[2].mxu1 }
 0x3fb   :  { %v506_v3 = vadd.f32 %v657_v63, %v505_v2  ;;  %v883_v4 = vpop.f32.mrb[3].mxu1 }
 0x3fd   :  { %v509_v5 = vmax.f32 %v506_v3, 0.0 }
 0x3ff   :  { %v510_v6 = vmul.f32 %v509_v5, %v509_v5 }
 0x401   :  { %511 = vadd.xlane.f32.xlu0 %v510_v6 }
 0x48e   :  { %v512_v19 = vpop.xlane.xlu0 %511 }
 0x48f   :  { %v513_v20 = vmax.f32 %v512_v19, 1e-24 }
 0x491   :  { %1052 = vrsqrt.f32 %v513_v20 }
 0x49b   :  { %v1053_v21 = vpop.eup %1052 }
 0x49c   :  { %v515_v22 = vmul.f32 %v1053_v21, %v509_v5 }
 0x49e   :  { %917 = vmatmul.mubr.f32.vlgmr.msra.gmra.mrb[4].mxu0 %v515_v22 }
 0x571   :  { %v605_v27 = vpop.f32.mrb[4].mxu0 }
 0x572   :  { %v606_v0 = vadd.f32 %v658_v26, %v605_v27  ;;  %v918_v28 = vpop.f32.mrb[5].mxu0 }
 0x574   :  { %v633_v29 = vsel %vm612_vm3, %v606_v0, 0.0  ;;  %v616_v30 = vsel %vm615_vm4, %v606_v0, -1e+30 }
 0x575   :  { %617 = vmax.xlane.f32.xlu0 %v616_v30 }
 0x602   :  { %v618_v31 = vpop.xlane.xlu0 %617 }
 0x603   :  { %v619_v32 = vsub.f32 %v616_v30, %v618_v31 }
 0x605   :  { %v620_v33 = vmul.f32 1.442695, %v619_v32 }
 0x607   :  { %1054 = vpow2.f32 %v620_v33 }
 0x611   :  { %v1055_v34 = vpop.eup %1054 }
 0x612   :  { %622 = vadd.xlane.f32.xlu1 %v1055_v34 }
 0x69f   :  { %v623_v35 = vpop.xlane.xlu1 %622 }
 0x6a0   :  { %1056 = vrcp.f32 %v623_v35 }
 0x6aa   :  { %v1057_v36 = vpop.eup %1056 }
 0x6ab   :  { %v625_v37 = vmul.f32 %v1057_v36, %v1055_v34 }
 0x6ad   :  { %v626_v38 = vmax.f32 %v625_v37, 1e-07 }
 0x6af   :  { %v627_v39 = vmin.f32 %v626_v38, 1.0 }
 0x6b1   :  { %v628_v40 = vsel %vm611_vm1, %v627_v39, 0.0 }
 0x6b2   :  { %629 = vadd.xlane.f32.xlu1 %v628_v40 }
 0x73f   :  { %v630_v41 = vpop.xlane.xlu1 %629 }
 0x740   :  { %1058 = vrcp.f32 %v630_v41 }
 0x74a   :  { %v1059_v42 = vpop.eup %1058 }
 0x74b   :  { %v632_v43 = vmul.f32 %v1059_v42, %v628_v40 }
 0x74d   :  { %v634_v44 = vadd.f32 %v633_v29, %v632_v43 }
 0x74f   :  { %635 = vst [vmem:[#allocation14] sm:$0xff] %v634_v44 }
 0x750   :  { %1225 = shalt.err (!%p1222_p4)
}
 0x751   :  { %s1226_s19 = scalar_lea.hbm %s1514_s12, 128 }
 0x752   :  { %p1227_p5 = scmp.ne.s32.totalorder %s1514_s12, %s1226_s19  ;;  %p1230_p6 = scmp.lt.u32.totalorder %s1226_s19, %s1514_s12 }
 0x754   :  { %p1232_p7 = pnand %p1230_p6, %p1227_p5 }
 0x756   :  { %1235 = shalt.err (!%p1232_p7)
}
 0x757   :  { %645 = dma.vmem_to_hbm [thread:$0]  %s643_s15, 128, %s1514_s12, [#allocation4]  }
 0x758   :  { %1244 = dma.done.wait [#allocation4], 128  }
 0x759   :  { %1245 = vsyncadd [#allocation4], 4294967168 }
 0x75a   :  { %649 = vsyncpa [#allocation3], 1 }
 0x75b   :  { %650 = vsyncpa [#allocation6], 1 }
 0x75c   :  { %651 = vsyncpa [#allocation9], 1 }
 0x75d   :  { %652 = vsyncpa [#allocation12], 1 }
 0x75e   :  { %653 = vsyncpa [#allocation4], 1 }

</bundles_post_ra>
